<compile_context>
chip_gen: v7x
topology: tpu7x:2x2x1
jax: 0.10.0
libtpu: 0.0.40
codegen_flags: <defaults>
</compile_context>

<pallas_src>
import functools
from math import sqrt

import jax
import jax.numpy as jnp
from jax.experimental import pallas as pl
from jax.experimental.pallas import tpu as pltpu


def _attn_kernel(q_ref, k_ref, v_ref, o_ref, *, scale, H, E, D, mxu_dtype):
    """One grid step: G (b, n) groups x TL query rows x all H heads.

    q_ref: (G, TL, H*E)   k_ref: (G, S, H*E)   v_ref: (G, S, H*D)
    o_ref: (G, TL, H*D)
    """
    f32 = jnp.float32
    head_outs = []
    # Static unroll over heads (heads never mix).  For large H move heads into
    # the grid instead (see TODO above) to bound vreg pressure.
    for h in range(H):
        # Fold scale into q (cheaper than scaling the (TL, S) scores when S>E).
        qh = q_ref[:, :, h * E:(h + 1) * E].astype(f32) * scale   # (G, TL, E)
        kh = k_ref[:, :, h * E:(h + 1) * E]                        # (G, S, E)
        vh = v_ref[:, :, h * D:(h + 1) * D]                        # (G, S, D)

        # Scores on the MXU; operands in mxu_dtype (bf16 for f32 inputs),
        # accumulation in f32.
        s = jnp.einsum("gle,gse->gls",
                       qh.astype(mxu_dtype), kh.astype(mxu_dtype),
                       preferred_element_type=f32)                 # (G, TL, S)

        # Numerically-stable softmax over S with DEFERRED normalization.
        m = jnp.max(s, axis=-1, keepdims=True)
        p = jnp.exp(s - m)                                          # un-normalized
        denom = jnp.sum(p, axis=-1, keepdims=True)                  # (G, TL, 1)

        o_h = jnp.einsum("gls,gsd->gld",
                         p.astype(mxu_dtype), vh.astype(mxu_dtype),
                         preferred_element_type=f32)                # (G, TL, D)
        # Exact normalization on the (smaller) output: G*TL*D multiplies
        # instead of G*TL*S, and no approx-reciprocal error.
        o_h = o_h * (1.0 / denom)
        head_outs.append(o_h.astype(o_ref.dtype))

    # Single full-width, lane-dense store of the whole (G, TL, H*D) tile
    # (avoids per-head masked stores at non-128-aligned lane offsets).
    o_ref[...] = jnp.concatenate(head_outs, axis=-1)


def _vmem_capacity_bytes():
    # Generation-aware VMEM sizing: 128 MiB on v5e/v6e, 64 MiB per TC on v7x.
    try:
        return int(pltpu.get_tpu_info().vmem_capacity_bytes)
    except Exception:
        return 64 * 1024 * 1024  # conservative fallback (v7x per-core size)


def _choose_tiles(bn, L, S, H, E, D, itemsize, budget_bytes):
    """Pick (G, TL): G = #(b,n) groups per step, TL = query-row tile.

    Feasibility: double-buffered per-step tiles plus the f32 softmax / output
    intermediates must fit `budget_bytes`.  Preference order:
      1. even leading-step count (keeps both v7x TensorCores busy),
      2. most work per step (largest G*TL -> fewest 0.35us step overheads),
      3. largest TL.
    """
    tl_cands = [t for t in range(1, L + 1)
                if L % t == 0 and (t == L or t % 8 == 0)]
    g_cands = [g for g in range(1, bn + 1) if bn % g == 0]

    def step_bytes(g, tl):
        # Double-buffered q/k/v/out tiles ...
        io = 2 * g * (tl * H * E + S * H * E + S * H * D + tl * H * D) * itemsize
        # ... plus one head's f32 scores/probs, all heads' f32 outputs, and the
        # staged output tile kept live for the single full-width store.
        scratch = g * (2 * tl * S * 4 + tl * H * D * 4 + tl * H * D * itemsize)
        return io + scratch

    feasible = [(g, tl) for g in g_cands for tl in tl_cands
                if step_bytes(g, tl) <= budget_bytes]
    if not feasible:
        # Fallback: smallest tiles; may spill but still compiles/runs.
        # TODO(synk): flash-style S tiling would remove this case entirely.
        return 1, min(tl_cands)

    def rank(cfg):
        g, tl = cfg
        lead_steps = bn // g
        even = (lead_steps % 2 == 0) or bn == 1
        return (even, g * tl, tl)

    return max(feasible, key=rank)


def attention_forward(queries, keys, values, attn_mask=None, scale=None,
                      mxu_dtype=None):
    """Pallas equivalent of Attention.forward (mask_flag=False, eval mode).

    queries: (B, N, L, H, E), keys: (B, N, S, H, E), values: (B, N, S, H, D)
    returns (V, None) with V of shape (B, N, L, H, D).
    """
    if attn_mask is not None:
        # TODO(synk): mask_flag=True (TriangularCausalMask) path not implemented.
        raise NotImplementedError(
            "attn_mask must be None: only the mask_flag=False path is implemented")

    B, N, L, H, E = queries.shape
    _, _, S, _, D = values.shape
    scale = float(scale) if scale is not None else 1.0 / sqrt(E)

    # bf16 MXU operands when inputs are f32 (MXU is bf16-native on v5e/v6e/v7x);
    # pass mxu_dtype=jnp.float32 for exact f32 matmuls.
    if mxu_dtype is None:
        mxu_dtype = jnp.bfloat16 if queries.dtype == jnp.float32 else queries.dtype

    BN = B * N
    # Free reshapes only (contiguous merges), no HBM transposes.
    q = queries.reshape(BN, L, H * E)
    k = keys.reshape(BN, S, H * E)
    v = values.reshape(BN, S, H * D)

    vmem_cap = _vmem_capacity_bytes()
    vmem_limit = (vmem_cap * 3) // 4            # headroom for compiler scratch
    budget = (vmem_cap * 2) // 5                # per-step working-set budget

    G, TL = _choose_tiles(BN, L, S, H, E, D, queries.dtype.itemsize, budget)
    # L-tile axis innermost: K/V block indices are constant across it, so the
    # pipeline keeps K/V resident in VMEM (no re-DMA between L tiles).
    grid = (BN // G, L // TL)

    kernel = functools.partial(_attn_kernel, scale=scale, H=H, E=E, D=D,
                               mxu_dtype=mxu_dtype)

    out = pl.pallas_call(
        kernel,
        out_shape=jax.ShapeDtypeStruct((BN, L, H * D), queries.dtype),
        grid_spec=pltpu.PrefetchScalarGridSpec(
            num_scalar_prefetch=0,
            grid=grid,
            in_specs=[
                pl.BlockSpec((G, TL, H * E), lambda i, j: (i, j, 0)),
                pl.BlockSpec((G, S, H * E), lambda i, j: (i, 0, 0)),
                pl.BlockSpec((G, S, H * D), lambda i, j: (i, 0, 0)),
            ],
            out_specs=pl.BlockSpec((G, TL, H * D), lambda i, j: (i, j, 0)),
        ),
        compiler_params=pltpu.CompilerParams(
            dimension_semantics=("parallel", "parallel"),
            vmem_limit_bytes=vmem_limit,
        ),
    )(q, k, v)

    V = out.reshape(B, N, L, H, D)              # free reshape back
    return V, None


def _reference(queries, keys, values, scale=None):
    B, N, L, H, E = queries.shape
    scale = scale if scale is not None else 1.0 / sqrt(E)
    scores = jnp.einsum("bnlhe,bnshe->bnhls", queries, keys,
                        precision=jax.lax.Precision.HIGHEST)
    attn = jax.nn.softmax(scale * scores, axis=-1)
    return jnp.einsum("bnhls,bnshd->bnlhd", attn, values,
                      precision=jax.lax.Precision.HIGHEST)


if __name__ == "__main__":
    key = jax.random.PRNGKey(0)
    B, N, L, S, H, E, D = 2, 2, 8, 8, 2, 32, 32

    kq, kk, kv = jax.random.split(key, 3)
    queries = jax.random.normal(kq, (B, N, L, H, E), dtype=jnp.float32)
    keys = jax.random.normal(kk, (B, N, S, H, E), dtype=jnp.float32)
    values = jax.random.normal(kv, (B, N, S, H, D), dtype=jnp.float32)

    V_ref = _reference(queries, keys, values)

    # Default path: bf16 MXU operands, f32 softmax / accumulation.
    V, attn = attention_forward(queries, keys, values)
    V = jax.block_until_ready(V)
    assert V.shape == (B, N, L, H, D)
    assert attn is None
    err_bf16 = float(jnp.max(jnp.abs(V - V_ref)))
    assert jnp.allclose(V, V_ref, atol=5e-2, rtol=5e-2), err_bf16

    # Exact path: f32 MXU operands, exact deferred normalization.
    V32, _ = attention_forward(queries, keys, values, mxu_dtype=jnp.float32)
    V32 = jax.block_until_ready(V32)
    err_f32 = float(jnp.max(jnp.abs(V32 - V_ref)))
    assert jnp.allclose(V32, V_ref, atol=1e-4, rtol=1e-4), err_f32

    print("KERNEL_OK")
</pallas_src>

<mosaic_0001>
module attributes {stable_mosaic.version = 11 : i64} {
  func.func @_attn_kernel(%arg0: i32, %arg1: i32, %arg2: memref<2x8x64xf32, #tpu.memory_space<vmem>>, %arg3: memref<2x8x64xf32, #tpu.memory_space<vmem>>, %arg4: memref<2x8x64xf32, #tpu.memory_space<vmem>>, %arg5: memref<2x8x64xf32, #tpu.memory_space<vmem>>) attributes {dimension_semantics = [#tpu.dimension_semantics<parallel>, #tpu.dimension_semantics<parallel>], iteration_bounds = array<i64: 2, 1>, scalar_prefetch = 0 : i64, scratch_operands = 0 : i64, tpu.core_type = #tpu.core_type<tc>, window_params = [{transform_indices = @transform_0, window_bounds = array<i64: 2, 8, 64>}, {transform_indices = @transform_1, window_bounds = array<i64: 2, 8, 64>}, {transform_indices = @transform_2, window_bounds = array<i64: 2, 8, 64>}, {transform_indices = @transform_3, window_bounds = array<i64: 2, 8, 64>}]} {
    %c0 = arith.constant 0 : index
    %c0_0 = arith.constant 0 : index
    %c0_1 = arith.constant 0 : index
    %0 = vector.load %arg2[%c0, %c0_0, %c0_1] : memref<2x8x64xf32, #tpu.memory_space<vmem>>, vector<2x8x32xf32>
    %cst = arith.constant 0.176776692 : f32
    %1 = vector.broadcast %cst : f32 to vector<2x8x32xf32>
    %2 = arith.mulf %0, %1 : vector<2x8x32xf32>
    %c0_2 = arith.constant 0 : index
    %c0_3 = arith.constant 0 : index
    %c0_4 = arith.constant 0 : index
    %3 = vector.load %arg3[%c0_2, %c0_3, %c0_4] : memref<2x8x64xf32, #tpu.memory_space<vmem>>, vector<2x8x32xf32>
    %c0_5 = arith.constant 0 : index
    %c0_6 = arith.constant 0 : index
    %c0_7 = arith.constant 0 : index
    %4 = vector.load %arg4[%c0_5, %c0_6, %c0_7] : memref<2x8x64xf32, #tpu.memory_space<vmem>>, vector<2x8x32xf32>
    %5 = arith.truncf %2 : vector<2x8x32xf32> to vector<2x8x32xbf16>
    %6 = arith.truncf %3 : vector<2x8x32xf32> to vector<2x8x32xbf16>
    "tpu.trace_start"() <{level = 10 : i32, message = "gle,gse->gls"}> : () -> ()
    %cst_8 = arith.constant dense<0.000000e+00> : vector<2x8x8xf32>
    %7 = tpu.matmul %5, %6, %cst_8 {dimension_numbers = #tpu.dot_dimension_numbers<[2], [2], [1], [1], [0, 0, 0, 1, 1, 1], [0], [0]>} : vector<2x8x32xbf16>, vector<2x8x32xbf16>, vector<2x8x8xf32> -> vector<2x8x8xf32>
    "tpu.trace_stop"() : () -> ()
    %cst_9 = arith.constant dense<0xFF800000> : vector<2x8xf32>
    %8 = vector.multi_reduction <maximumf>, %7, %cst_9 [2] : vector<2x8x8xf32> to vector<2x8xf32>
    %9 = vector.shape_cast %8 : vector<2x8xf32> to vector<2x8x1xf32>
    %10 = vector.broadcast %9 : vector<2x8x1xf32> to vector<2x8x8xf32>
    %11 = arith.subf %7, %10 : vector<2x8x8xf32>
    %12 = math.exp %11 : vector<2x8x8xf32>
    %cst_10 = arith.constant dense<0.000000e+00> : vector<2x8xf32>
    %13 = vector.multi_reduction <add>, %12, %cst_10 [2] : vector<2x8x8xf32> to vector<2x8xf32>
    %14 = vector.shape_cast %13 : vector<2x8xf32> to vector<2x8x1xf32>
    %15 = arith.truncf %12 : vector<2x8x8xf32> to vector<2x8x8xbf16>
    %16 = arith.truncf %4 : vector<2x8x32xf32> to vector<2x8x32xbf16>
    "tpu.trace_start"() <{level = 10 : i32, message = "gls,gsd->gld"}> : () -> ()
    %cst_11 = arith.constant dense<0.000000e+00> : vector<2x8x32xf32>
    %17 = tpu.matmul %15, %16, %cst_11 {dimension_numbers = #tpu.dot_dimension_numbers<[2], [1], [1], [2], [0, 0, 0, 1, 1, 2], [0], [0]>} : vector<2x8x8xbf16>, vector<2x8x32xbf16>, vector<2x8x32xf32> -> vector<2x8x32xf32>
    "tpu.trace_stop"() : () -> ()
    %cst_12 = arith.constant 1.000000e+00 : f32
    %18 = vector.broadcast %cst_12 : f32 to vector<2x8x1xf32>
    %19 = arith.divf %18, %14 : vector<2x8x1xf32>
    %20 = vector.broadcast %19 : vector<2x8x1xf32> to vector<2x8x32xf32>
    %21 = arith.mulf %17, %20 : vector<2x8x32xf32>
    %c0_13 = arith.constant 0 : index
    %c0_14 = arith.constant 0 : index
    %c32 = arith.constant 32 : index
    %22 = vector.load %arg2[%c0_13, %c0_14, %c32] : memref<2x8x64xf32, #tpu.memory_space<vmem>>, vector<2x8x32xf32>
    %cst_15 = arith.constant 0.176776692 : f32
    %23 = vector.broadcast %cst_15 : f32 to vector<2x8x32xf32>
    %24 = arith.mulf %22, %23 : vector<2x8x32xf32>
    %c0_16 = arith.constant 0 : index
    %c0_17 = arith.constant 0 : index
    %c32_18 = arith.constant 32 : index
    %25 = vector.load %arg3[%c0_16, %c0_17, %c32_18] : memref<2x8x64xf32, #tpu.memory_space<vmem>>, vector<2x8x32xf32>
    %c0_19 = arith.constant 0 : index
    %c0_20 = arith.constant 0 : index
    %c32_21 = arith.constant 32 : index
    %26 = vector.load %arg4[%c0_19, %c0_20, %c32_21] : memref<2x8x64xf32, #tpu.memory_space<vmem>>, vector<2x8x32xf32>
    %27 = arith.truncf %24 : vector<2x8x32xf32> to vector<2x8x32xbf16>
    %28 = arith.truncf %25 : vector<2x8x32xf32> to vector<2x8x32xbf16>
    "tpu.trace_start"() <{level = 10 : i32, message = "gle,gse->gls"}> : () -> ()
    %cst_22 = arith.constant dense<0.000000e+00> : vector<2x8x8xf32>
    %29 = tpu.matmul %27, %28, %cst_22 {dimension_numbers = #tpu.dot_dimension_numbers<[2], [2], [1], [1], [0, 0, 0, 1, 1, 1], [0], [0]>} : vector<2x8x32xbf16>, vector<2x8x32xbf16>, vector<2x8x8xf32> -> vector<2x8x8xf32>
    "tpu.trace_stop"() : () -> ()
    %cst_23 = arith.constant dense<0xFF800000> : vector<2x8xf32>
    %30 = vector.multi_reduction <maximumf>, %29, %cst_23 [2] : vector<2x8x8xf32> to vector<2x8xf32>
    %31 = vector.shape_cast %30 : vector<2x8xf32> to vector<2x8x1xf32>
    %32 = vector.broadcast %31 : vector<2x8x1xf32> to vector<2x8x8xf32>
    %33 = arith.subf %29, %32 : vector<2x8x8xf32>
    %34 = math.exp %33 : vector<2x8x8xf32>
    %cst_24 = arith.constant dense<0.000000e+00> : vector<2x8xf32>
    %35 = vector.multi_reduction <add>, %34, %cst_24 [2] : vector<2x8x8xf32> to vector<2x8xf32>
    %36 = vector.shape_cast %35 : vector<2x8xf32> to vector<2x8x1xf32>
    %37 = arith.truncf %34 : vector<2x8x8xf32> to vector<2x8x8xbf16>
    %38 = arith.truncf %26 : vector<2x8x32xf32> to vector<2x8x32xbf16>
    "tpu.trace_start"() <{level = 10 : i32, message = "gls,gsd->gld"}> : () -> ()
    %cst_25 = arith.constant dense<0.000000e+00> : vector<2x8x32xf32>
    %39 = tpu.matmul %37, %38, %cst_25 {dimension_numbers = #tpu.dot_dimension_numbers<[2], [1], [1], [2], [0, 0, 0, 1, 1, 2], [0], [0]>} : vector<2x8x8xbf16>, vector<2x8x32xbf16>, vector<2x8x32xf32> -> vector<2x8x32xf32>
    "tpu.trace_stop"() : () -> ()
    %cst_26 = arith.constant 1.000000e+00 : f32
    %40 = vector.broadcast %cst_26 : f32 to vector<2x8x1xf32>
    %41 = arith.divf %40, %36 : vector<2x8x1xf32>
    %42 = vector.broadcast %41 : vector<2x8x1xf32> to vector<2x8x32xf32>
    %43 = arith.mulf %39, %42 : vector<2x8x32xf32>
    %44 = tpu.concatenate %21, %43 in 2 : vector<2x8x32xf32>, vector<2x8x32xf32> -> vector<2x8x64xf32>
    %c0_27 = arith.constant 0 : index
    %c0_28 = arith.constant 0 : index
    %c0_29 = arith.constant 0 : index
    %45 = vector.load %arg5[%c0_27, %c0_28, %c0_29] : memref<2x8x64xf32, #tpu.memory_space<vmem>>, vector<2x8x64xf32>
    tpu.vector_store %arg5[%c0_27, %c0_28, %c0_29], %44 {strides = array<i32>} : memref<2x8x64xf32, #tpu.memory_space<vmem>>, vector<2x8x64xf32>,
    return
  }
  func.func @transform_0(%arg0: i32, %arg1: i32) -> (i32, i32, i32) {
    %c0_i32 = arith.constant 0 : i32
    %c0_i32_0 = arith.constant 0 : i32
    return %arg0, %arg1, %c0_i32 : i32, i32, i32
  }
  func.func @transform_1(%arg0: i32, %arg1: i32) -> (i32, i32, i32) {
    %c0_i32 = arith.constant 0 : i32
    %c0_i32_0 = arith.constant 0 : i32
    %c0_i32_1 = arith.constant 0 : i32
    return %arg0, %c0_i32, %c0_i32_0 : i32, i32, i32
  }
  func.func @transform_2(%arg0: i32, %arg1: i32) -> (i32, i32, i32) {
    %c0_i32 = arith.constant 0 : i32
    %c0_i32_0 = arith.constant 0 : i32
    %c0_i32_1 = arith.constant 0 : i32
    return %arg0, %c0_i32, %c0_i32_0 : i32, i32, i32
  }
  func.func @transform_3(%arg0: i32, %arg1: i32) -> (i32, i32, i32) {
    %c0_i32 = arith.constant 0 : i32
    %c0_i32_0 = arith.constant 0 : i32
    return %arg0, %arg1, %c0_i32 : i32, i32, i32
  }
}

</mosaic_0001>

<bundles_post_ra>
// kernel: tpu_custom_call.1
= control target key start
LH: loop header
LB: loop body
LE: loop exit
PB: predicated region body
PF: predicated region fallthrough
CT: control target
= control target key end

     0   :  { %s1674_s0 = inlined_call_operand.hbm [shape: f32[4,8,64], index: 0, kind: input, shape index: {}]   ;;  %s1675_s1 = inlined_call_operand.hbm [shape: f32[4,8,64], index: 1, kind: input, shape index: {}]   ;;  %s1676_s2 = inlined_call_operand.hbm [shape: f32[4,8,64], index: 2, kind: input, shape index: {}]   ;;  %s1677_s3 = inlined_call_operand.hbm [shape: f32[4,8,64], index: 3, kind: output, shape index: {}]  }
   0x1   :  { %1687 = sst [smem:[#allocation15_spill]] %s1675_s1 }
   0x2   :  { %8 = vsyncpa [#allocation3], 0 }
   0x3   :  { %10 = vsyncpa [#allocation3 + $0x1], 0 }
   0x4   :  { %11 = vsyncpa [#allocation6], 0 }
   0x5   :  { %13 = vsyncpa [#allocation6 + $0x1], 0 }
   0x6   :  { %14 = vsyncpa [#allocation4], 0 }
   0x7   :  { %16 = vsyncpa [#allocation4 + $0x1], 0  ;;  %s1318_s12 = smov 0   ;;  %s1320_s13 = smov 0  }
   0x8   :  { %s1322_s14 = smov 0   ;;  %s1324_s15 = smov 0  }
   0x9   :  { %s1326_s16 = smov 0   ;;  %s1328_s17 = smov 0  }
   0xa LB: > { %1688 = sst [smem:[#allocation12_spill]] %s1280_s16  ;;  %s1349_s18 = sadd.s32 4294967295, %s1284_s17   ;;  %s1284_s17 = sphi %s1328_s17, %s22_s17   ;;  %s1280_s16 = sphi %s1326_s16, %s1711_s16   ;;  %s1276_s15 = sphi %s1324_s15, %s1710_s15   ;;  %s1272_s14 = sphi %s1322_s14, %s1714_s14   ;;  %s1268_s13 = sphi %s1320_s13, %s1713_s13   ;;  %s1264_s12 = sphi %s1318_s12, %s1712_s12  }
   0xb   : > { %s914_s19 = sadd.s32 4294967294, %s1284_s17   ;;  %s34_s20 = sadd.s32 1, %s1280_s16 }
   0xc   : > { %s43_s21 = sadd.s32 1, %s1272_s14  ;;  %p36_p0 = scmp.ge.s32.totalorder %s34_s20, 2 }
   0xd   : > { %p50_p1 = scmp.ne.s32.totalorder %s1272_s14, %s1268_s13  ;;  %p51_p2 = scmp.eq.s32.totalorder %s1284_s17, 0 }
   0xe   : > { %p56_p3 = scmp.ne.s32.totalorder %s1268_s13, %s1264_s12  ;;  %s1716_s20 = smov (%p36_p0, %s34_s20), 0 }
   0xf   : > { %1689 = sst [smem:[#allocation13_spill]] %s1716_s20  ;;  %p1361_p4 = por %p51_p2, %p50_p1 }
  0x10   : > { %p57_p5 = scmp.eq.s32.totalorder %s1349_s18, 0  ;;  %s38_s23 = ssub.s32 %s1280_s16, %s1716_s20 }
  0x11   : > { %p134_p6 = scmp.eq.s32.totalorder %s1349_s18, 1  ;;  %p41_p7 = scmp.eq.s32.totalorder %s38_s23, 0 }
  0x12   : > { %p1369_p8 = por %p57_p5, %p56_p3  ;;  %p140_p10 = scmp.eq.s32.totalorder %s914_s19, 1 }
  0x13   : > { %p1373_p9 = por %p134_p6, %p50_p1  ;;  %p1034_p13 = scmp.lt.s32.totalorder %s1284_s17, 2 }
  0x14   : > { %s1691_s24 = scalar_select %p1369_p8, 1, 0 }
  0x15   : > { %s1692_s25 = scalar_select %p1373_p9, 1, 0 }
  0x16   : > { %s1378_s26 = scalar_select %p41_p7, %s1272_s14, %s43_s21  }
  0x17   : > { %p1380_p11 = por %p140_p10, %p56_p3  ;;  %s1680_s28 = sand.u32 1, %s1272_s14  }
  0x18   : > { %1693 = sst [smem:[#allocation14_spill]] %s1378_s26  ;;  %s1389_s29 = sshll.u32 %s1680_s28, 4 }
  0x19   : > { %s1694_s27 = scalar_select %p1380_p11, 1, 0 }
  0x1a   : > { %s1392_s30 = sshll.u32 %s1280_s16, 8  ;;  %p1396_p0 = pnand %p1034_p13, %p1361_p4 }
  0x1b   : > { %s182_s5 = sand.u32 1, %s1284_s17   ;;  %s1696_s1 = sld [smem:[#allocation15_spill]] }
  0x1c   : > { %s186_s9 = scalar_lea.vmem [#allocation5], %s1389_s29  ;;  %s1412_s11 = scalar_lea.sflag [#allocation6], %s182_s5 }
  0x1d   : > { %s193_s10 = sshll.u32 %s186_s9, 4  ;;  %p1418_p4 = pneg %p1396_p0  ;;  %s1409_s10 = int_to_ptr.vmem [resolvable:$true] %s193_s10 }
  0x21   : > { %s1405_s8 = scalar_lea.hbm %s1696_s1, %s1392_s30  ;;  %s1113_s6 = scalar_lea.hbm %s1696_s1, 512 }
  0x22   : > { %s1108_s19 = scalar_lea.hbm %s1405_s8, 256  ;;  %p1114_p7 = scmp.lt.u32.totalorder %s1405_s8, %s1696_s1 }
  0x23   : > { %p1109_p3 = scmp.ne.s32.totalorder %s1405_s8, %s1108_s19  ;;  %p1115_p10 = scmp.lt.u32.totalorder %s1113_s6, %s1108_s19 }
  0x24   : > { %p1117_p12 = scmp.lt.u32.totalorder %s1108_s19, %s1405_s8 }
  0x25   : > { %p1111_p5 = pnand %p1418_p4, %p1109_p3  ;;  %p1116_p13 = por %p1115_p10, %p1114_p7 }
  0x27   : > { %p1112_p6 = pneg %p1111_p5  ;;  %p1118_p1 = por %p1117_p12, %p1116_p13 }
  0x29   : > { %p1119_p2 = pnand %p1118_p1, %p1112_p6 }
  0x2b   : > { %1122 = shalt.err (!%p1119_p2)
}
  0x2c   : > { %s1123_s5 = scalar_lea.vmem %s1409_s10, 256  ;;  %s1286_s22 = smov [#allocation5]  }
  0x2d   : > { %p1124_p3 = scmp.ne.s32.totalorder %s1409_s10, %s1123_s5  ;;  %s1128_s23 = sshll.u32 %s1286_s22, 4  ;;  %s1129_s23 = int_to_ptr.vmem [resolvable:$false] %s1128_s23 }
  0x2e   : > { %s1130_s7 = scalar_lea.vmem %s1129_s23, 512  ;;  %p1131_p9 = scmp.lt.s32.totalorder %s1409_s10, %s1129_s23 }
  0x2f   : > { %p1126_p5 = pnand %p1124_p3, %p1418_p4  ;;  %p1132_p8 = scmp.lt.s32.totalorder %s1130_s7, %s1123_s5 }
  0x31   : > { %p1127_p11 = pneg %p1126_p5  ;;  %p1133_p7 = por %p1132_p8, %p1131_p9 }
  0x33   : > { %p1134_p10 = pnand %p1133_p7, %p1127_p11 }
  0x35   : > { %1137 = shalt.err (!%p1134_p10)
}
  0x36   : > { %s1681_s19 = smov 128   ;;  %s1683_s6 = smov 8  }
  0x37   : > { %1026 = dma.hbm_to_vmem [thread:$0]  (!%p1396_p0), %s1405_s8, 256, %s1409_s10, %s1412_s11, %s1681_s19, %s1681_s19, %s1683_s6  }
  0x38   : > { %p1698_p8 = scmp.lt.s32.totalorder %s1284_s17, 3  ;;  %p1699_p9 = scmp.ge.s32.totalorder %s1284_s17, 1 }
  0x39   : > { %s1457_s23 = scalar_lea.hbm %s1674_s0, %s1392_s30  ;;  %s164_s7 = scalar_lea.vmem [#allocation2], %s1389_s29 }
  0x3a   : > { %p1449_p11 = pnand %p1699_p9, %p1698_p8  ;;  %s172_s28 = sshll.u32 %s164_s7, 4  ;;  %s1460_s28 = int_to_ptr.vmem [resolvable:$true] %s172_s28 }
  0x3b   : > { %s1466_s19 = scalar_lea.hbm %s1676_s2, %s1392_s30  ;;  %s1701_s6 = sand.u32 1, %s1272_s14  }
  0x3c   : > { %s1700_s9 = scalar_select %p1449_p11, 1, 0 }
  0x3d   : > { %s1470_s1 = scalar_lea.sflag [#allocation3], %s1701_s6  ;;  %s1138_s20 = scalar_lea.hbm %s1457_s23, 256 }
  0x3e   : > { %p1139_p12 = scmp.ne.s32.totalorder %s1457_s23, %s1138_s20  ;;  %s1143_s16 = scalar_lea.hbm %s1674_s0, 512 }
  0x3f   : > { %p1144_p6 = scmp.lt.u32.totalorder %s1457_s23, %s1674_s0  ;;  %p1145_p13 = scmp.lt.u32.totalorder %s1143_s16, %s1138_s20 }
  0x40   : > { %p1141_p1 = pnand %p1139_p12, %p1418_p4  ;;  %p1147_p5 = scmp.lt.u32.totalorder %s1138_s20, %s1457_s23 }
  0x41   : > { %p1146_p3 = por %p1145_p13, %p1144_p6 }
  0x42   : > { %p1142_p2 = pneg %p1141_p1 }
  0x43   : > { %p1148_p7 = por %p1147_p5, %p1146_p3 }
  0x45   : > { %p1149_p10 = pnand %p1148_p7, %p1142_p2 }
  0x47   : > { %1152 = shalt.err (!%p1149_p10)
}
  0x48   : > { %s1153_s30 = scalar_lea.vmem %s1460_s28, 256  ;;  %s1289_s6 = smov [#allocation2]  }
  0x49   : > { %p1154_p8 = scmp.ne.s32.totalorder %s1460_s28, %s1153_s30  ;;  %s1158_s8 = sshll.u32 %s1289_s6, 4  ;;  %s1159_s8 = int_to_ptr.vmem [resolvable:$false] %s1158_s8 }
  0x4a   : > { %s1160_s26 = scalar_lea.vmem %s1159_s8, 512  ;;  %p1161_p1 = scmp.lt.s32.totalorder %s1460_s28, %s1159_s8 }
  0x4b   : > { %p1156_p9 = pnand %p1154_p8, %p1418_p4  ;;  %p1162_p11 = scmp.lt.s32.totalorder %s1160_s26, %s1153_s30 }
  0x4d   : > { %p1157_p12 = pneg %p1156_p9  ;;  %p1163_p6 = por %p1162_p11, %p1161_p1 }
  0x4f   : > { %p1164_p13 = pnand %p1163_p6, %p1157_p12 }
  0x51   : > { %1167 = shalt.err (!%p1164_p13)
}
  0x52   : > { %s1702_s16 = smov 8   ;;  %s1703_s20 = smov 128  }
  0x53   : > { %1023 = dma.hbm_to_vmem [thread:$0]  (!%p1396_p0), %s1457_s23, 256, %s1460_s28, %s1470_s1, %s1703_s20, %s1703_s20, %s1702_s16  }
  0x54   : > { %s207_s10 = scalar_lea.vmem [#allocation7], %s1389_s29  ;;  %s1168_s22 = scalar_lea.hbm %s1466_s19, 256 }
  0x55   : > { %s214_s5 = sshll.u32 %s207_s10, 4  ;;  %p1169_p11 = scmp.ne.s32.totalorder %s1466_s19, %s1168_s22  ;;  %s1498_s5 = int_to_ptr.vmem [resolvable:$true] %s214_s5 }
  0x56   : > { %s1173_s6 = scalar_lea.hbm %s1676_s2, 512  ;;  %p1174_p5 = scmp.lt.u32.totalorder %s1466_s19, %s1676_s2 }
  0x57   : > { %p1171_p2 = pnand %p1169_p11, %p1418_p4  ;;  %p1175_p7 = scmp.lt.u32.totalorder %s1173_s6, %s1168_s22 }
  0x58   : > { %p1177_p8 = scmp.lt.u32.totalorder %s1168_s22, %s1466_s19 }
  0x59   : > { %p1172_p3 = pneg %p1171_p2  ;;  %p1176_p10 = por %p1175_p7, %p1174_p5 }
  0x5b   : > { %p1178_p9 = por %p1177_p8, %p1176_p10 }
  0x5d   : > { %p1179_p12 = pnand %p1178_p9, %p1172_p3 }
  0x5f   : > { %1182 = shalt.err (!%p1179_p12)
}
  0x60   : > { %s1183_s1 = scalar_lea.vmem %s1498_s5, 256  ;;  %s1290_s28 = smov [#allocation7]  }
  0x61   : > { %p1184_p1 = scmp.ne.s32.totalorder %s1498_s5, %s1183_s1  ;;  %s1188_s29 = sshll.u32 %s1290_s28, 4  ;;  %s1189_s29 = int_to_ptr.vmem [resolvable:$false] %s1188_s29 }
  0x62   : > { %s1190_s23 = scalar_lea.vmem %s1189_s29, 512  ;;  %p1191_p11 = scmp.lt.s32.totalorder %s1498_s5, %s1189_s29 }
  0x63   : > { %p1186_p6 = pnand %p1184_p1, %p1418_p4  ;;  %p1192_p2 = scmp.lt.s32.totalorder %s1190_s23, %s1183_s1 }
  0x65   : > { %p1187_p13 = pneg %p1186_p6  ;;  %p1193_p5 = por %p1192_p2, %p1191_p11 }
  0x67   : > { %p1194_p7 = pnand %p1193_p5, %p1187_p13 }
  0x69   : > { %1197 = shalt.err (!%p1194_p7)
}
  0x6a   : > { %1029 = dma.hbm_to_vmem [thread:$0]  (!%p1396_p0), %s1466_s19, 256, %s1498_s5, %s1412_s11, %s1703_s20, %s1703_s20, %s1702_s16  }
  0x6b   : > { %p1704_p4 = scmp.ne.s32.totalorder %s1700_s9, 0 }
  0x6c   : > { %s1528_s21 = sand.u32 (!%p1704_p4), 1, %s1268_s13   ;;  %p1705_p3 = scmp.ne.s32.totalorder (!%p1704_p4), %s1691_s24, 0 }
  0x6d   : > { %226 = sbr.rel (%p1704_p4) target bundleno = 1232 (0x4d0), region = 32  ;;  %s1531_s10 = sshll.u32 (!%p1704_p4), %s1528_s21, 4 }
  0x6e   : > { %s229_s4 = scalar_lea.sflag (!%p1704_p4), [#allocation3], %s1528_s21  ;;  %s232_s22 = scalar_lea.vmem (!%p1704_p4), [#allocation2], %s1531_s10 }
  0x74   : > { %1251 = dma.done.wait (%p1705_p3), %s229_s4, 256  }
  0x75   : > { %1253 = vsyncadd (%p1705_p3), %s229_s4, 4294967040  ;;  %s237_s11 = sand.u32 1, %s1349_s18   ;;  %s241_s9 = scalar_lea.vmem [#allocation5], %s1531_s10 }
  0x76   : > { %s238_s19 = scalar_lea.sflag [#allocation6], %s237_s11 }
  0x77   : > { %1255 = dma.done.wait (%p1705_p3), %s238_s19, 512  }
  0x78   : > { %1257 = vsyncadd (%p1705_p3), %s238_s19, 4294966784  ;;  %v1291_v0 = vmov 0.0   ;;  %vm1292_vm0 = vmmov 0   ;;  %v292_v1 = vld [vmem:[%s241_s9] sm:$0xff]  ;;  %vm300_vm1 = vcmask 261120   ;;  %v293_v2 = vld [vmem:[%s241_s9 + $0x8] sm:$0xff] }
  0x79   : > { %964 = vmatprep.subr.bf16.mxu0 %v1291_v0  ;;  %970 = vmatprep.subr.bf16.mxu1 %v1291_v0  ;;  %v288_v3 = vld [vmem:[%s232_s22] sm:$0xff]  ;;  %v298_v4 = vpack.c.bf16 %v292_v1, %v292_v1  ;;  %v299_v5 = vpack.c.bf16 %v293_v2, %v293_v2  ;;  %v289_v6 = vld [vmem:[%s232_s22 + $0x8] sm:$0xff]  ;;  %s1293_s18 = smov 96   ;;  %vm393_vm2 = vcmask 64512   ;;  %s250_s24 = scalar_lea.vmem [#allocation7], %s1531_s10  ;;  %vm419_vm3 = vcmask 1043456  }
  0x7a   : > { %966 = vmatprep.mubr.msk.bf16.mxu0 %vm1292_vm0, %v1291_v0  ;;  %972 = vmatprep.mubr.msk.bf16.mxu1 %vm1292_vm0, %v1291_v0  ;;  %v290_v9 = vmul.f32 0.17677669, %v288_v3  ;;  %v291_v10 = vmul.f32 0.17677669, %v289_v6  ;;  %v294_v23 = vld [vmem:[%s250_s24] sm:$0xff]  ;;  %v295_v26 = vld [vmem:[%s250_s24 + $0x8] sm:$0xff] }
  0x7b   : > { %v305_v7 = vsel %vm300_vm1, %v298_v4, 0  ;;  %v351_v8 = vsel %vm300_vm1, %v299_v5, 0  ;;  %531 = vrot.lane.b32.xlu1 %v298_v4, %s1293_s18  ;;  %v414_v24 = vpack.c.bf16 %v294_v23, %v294_v23  ;;  %v415_v27 = vpack.c.bf16 %v295_v26, %v295_v26  ;;  %s1294_s16 = smov 32   ;;  %s282_s20 = scalar_lea.vmem [#allocation8], %s1531_s10 }
  0x7c   : > { %965 = vmatpush3.bf16.xpose.msra.mxu0 %v305_v7  ;;  %971 = vmatpush3.bf16.xpose.msra.mxu1 %v351_v8  ;;  %v296_v11 = vpack.c.bf16 %v290_v9, %v290_v9  ;;  %v297_v12 = vpack.c.bf16 %v291_v10, %v291_v10  ;;  %vm767_vm4 = vcmask 523264   ;;  %s785_s5 = sshll.u32 %s282_s20, 4  ;;  %s947_s7 = sshll.u32 %s1276_s15, 8  ;;  %s1618_s5 = int_to_ptr.vmem [resolvable:$true] %s785_s5 }
  0x7d   : > { %976 = vmatprep.subr.bf16.mxu0 %v1291_v0  ;;  %982 = vmatprep.subr.bf16.mxu1 %v1291_v0  ;;  %v421_v25 = vsel %vm419_vm3, %v414_v24, 0  ;;  %v467_v28 = vsel %vm419_vm3, %v415_v27, 0  ;;  %s1624_s8 = scalar_lea.hbm %s1677_s3, %s947_s7  ;;  %s771_s15 = scalar_lea.sflag [#allocation4], %s1528_s21 }
  0x7e   : > { %s1198_s26 = scalar_lea.vmem %s1618_s5, 256  ;;  %p1706_p10 = scmp.ne.s32.totalorder %s1692_s25, 0 }
  0x7f   : > { %583 = vrot.lane.b32.xlu1 %v299_v5, %s1293_s18  ;;  %p1199_p0 = scmp.ne.s32.totalorder %s1618_s5, %s1198_s26  ;;  %s1295_s1 = smov [#allocation8]  }
  0x80   : > { %s1202_s28 = sshll.u32 %s1295_s1, 4  ;;  %s1203_s28 = int_to_ptr.vmem [resolvable:$false] %s1202_s28 }
  0x81   : > { %p1200_p8 = pnand %p1199_p0, %p1706_p10  ;;  %s1204_s29 = scalar_lea.vmem %s1203_s28, 512 }
  0x82   : > { %p1205_p12 = scmp.lt.s32.totalorder %s1618_s5, %s1203_s28  ;;  %p1206_p1 = scmp.lt.s32.totalorder %s1204_s29, %s1198_s26 }
  0x83   : > { %967 = vmatmul.mubr.msk.bf16.vlgmr.msra.gmra.mrb[0].mxu0 %vm300_vm1, %v296_v11  ;;  %973 = vmatmul.mubr.msk.bf16.vlgmr.msra.gmra.mrb[0].mxu1 %vm300_vm1, %v297_v12  ;;  %p1201_p9 = pneg %p1200_p8 }
  0x84   : > { %978 = vmatprep.mubr.msk.bf16.mxu0 %vm1292_vm0, %v1291_v0  ;;  %984 = vmatprep.mubr.msk.bf16.mxu1 %vm1292_vm0, %v1291_v0  ;;  %p1207_p6 = por %p1206_p1, %p1205_p12 }
  0x85   : > { %580 = vrot.lane.b32.xlu1 %v297_v12, %s1293_s18  ;;  %977 = vmatpush3.bf16.msra.mxu0 %v421_v25 }
  0x86   : > { %988 = vmatprep.subr.bf16.mxu0 %v1291_v0  ;;  %983 = vmatpush3.bf16.msra.mxu1 %v467_v28  ;;  %p1208_p13 = pnand %p1207_p6, %p1201_p9 }
  0x87   : > { %994 = vmatprep.subr.bf16.mxu1 %v1291_v0 }
  0xed   : > { %v532_v35 = vpop.permute.xlu1 %531 }
  0xee   : > { %v537_v37 = vsel %vm300_vm1, %v532_v35, 0 }
  0xf1   : > { %v584_v39 = vpop.permute.xlu1 %583 }
  0xf2   : > { %v589_v41 = vsel %vm300_vm1, %v584_v39, 0 }
  0xf7   : > { %v581_v44 = vpop.permute.xlu1 %580 }
 0x156   : > { %v341_v13 = vpop.f32.mrb[0].mxu0  ;;  %v387_v14 = vpop.f32.mrb[0].mxu1 }
 0x157   : > { %v968_v15 = vpop.f32.mrb[1].mxu0  ;;  %v974_v16 = vpop.f32.mrb[1].mxu1  ;;  %v394_v17 = vsel %vm393_vm2, %v341_v13, -inf  ;;  %v397_v22 = vsel %vm393_vm2, %v387_v14, -inf }
 0x158   : > { %395 = vmax.xlane.f32.xlu0 %v394_v17  ;;  %v344_v18 = vpop.f32.mrb[2].mxu0  ;;  %v390_v19 = vpop.f32.mrb[2].mxu1 }
 0x159   : > { %v969_v20 = vpop.f32.mrb[3].mxu0  ;;  %v975_v21 = vpop.f32.mrb[3].mxu1 }
 0x15c   : > { %398 = vmax.xlane.f32.xlu0 %v397_v22 }
 0x172   : > { %528 = vrot.lane.b32.xlu0 %v296_v11, %s1293_s18 }
 0x1e5   : > { %v396_v29 = vpop.xlane.xlu0 %395 }
 0x1e6   : > { %v400_v30 = vsub.f32 %v341_v13, %v396_v29 }
 0x1e8   : > { %v402_v31 = vmul.f32 1.442695, %v400_v30 }
 0x1e9   : > { %v399_v32 = vpop.xlane.xlu0 %398 }
 0x1ea   : > { %1092 = vpow2.f32 %v402_v31  ;;  %v401_v33 = vsub.f32 %v387_v14, %v399_v32 }
 0x1ec   : > { %v404_v34 = vmul.f32 1.442695, %v401_v33 }
 0x1ed   : > { %v529_v43 = vpop.permute.xlu0 %528 }
 0x1ee   : > { %1094 = vpow2.f32 %v404_v34 }
 0x1f4   : > { %v1572_v36 = vpop.eup %1092 }
 0x1f5   : > { %v412_v38 = vpack.c.bf16 %v1572_v36, %v1572_v36  ;;  %v406_v14 = vsel %vm393_vm2, %v1572_v36, 0.0 }
 0x1f7   : > { %979 = vmatmul.mubr.msk.bf16.vlgmr.msra.gmra.mrb[4].mxu0 %vm393_vm2, %v412_v38 }
 0x1f8   : > { %v1578_v40 = vpop.eup %1094  ;;  %989 = vmatpush3.bf16.xpose.msra.mxu0 %v537_v37  ;;  %990 = vmatprep.mubr.msk.bf16.mxu0 %vm1292_vm0, %v1291_v0 }
 0x1f9   : > { %v413_v42 = vpack.c.bf16 %v1578_v40, %v1578_v40  ;;  %1000 = vmatprep.subr.bf16.mxu0 %v1291_v0  ;;  %v409_v16 = vsel %vm393_vm2, %v1578_v40, 0.0 }
 0x1fb   : > { %985 = vmatmul.mubr.msk.bf16.vlgmr.msra.gmra.mrb[4].mxu1 %vm393_vm2, %v413_v42 }
 0x1fc   : > { %995 = vmatpush3.bf16.xpose.msra.mxu1 %v589_v41  ;;  %996 = vmatprep.mubr.msk.bf16.mxu1 %vm1292_vm0, %v1291_v0 }
 0x1fd   : > { %1006 = vmatprep.subr.bf16.mxu1 %v1291_v0 }
 0x1ff   : > { %991 = vmatmul.mubr.msk.bf16.vlgmr.msra.gmra.mrb[8].mxu0 %vm300_vm1, %v529_v43 }
 0x200   : > { %1002 = vmatprep.mubr.msk.bf16.mxu0 %vm1292_vm0, %v1291_v0 }
 0x203   : > { %997 = vmatmul.mubr.msk.bf16.vlgmr.msra.gmra.mrb[8].mxu1 %vm300_vm1, %v581_v44 }
 0x204   : > { %1008 = vmatprep.mubr.msk.bf16.mxu1 %vm1292_vm0, %v1291_v0 }
 0x2ca   : > { %v1596_v45 = vpop.f32.mrb[4].mxu0 }
 0x2cb   : > { %v980_v46 = vpop.f32.mrb[5].mxu0 }
 0x2cc   : > { %v460_v47 = vpop.f32.mrb[6].mxu0 }
 0x2cd   : > { %v981_v48 = vpop.f32.mrb[7].mxu0 }
 0x2ce   : > { %v1598_v49 = vpop.f32.mrb[4].mxu1 }
 0x2cf   : > { %v986_v50 = vpop.f32.mrb[5].mxu1 }
 0x2d0   : > { %v506_v51 = vpop.f32.mrb[6].mxu1 }
 0x2d1   : > { %v987_v52 = vpop.f32.mrb[7].mxu1 }
 0x2d2   : > { %v573_v53 = vpop.f32.mrb[8].mxu0 }
 0x2d3   : > { %v631_v54 = vsel %vm393_vm2, %v573_v53, -inf  ;;  %v992_v55 = vpop.f32.mrb[9].mxu0 }
 0x2d4   : > { %632 = vmax.xlane.f32.xlu1 %v631_v54  ;;  %v576_v56 = vpop.f32.mrb[10].mxu0 }
 0x2d5   : > { %v993_v57 = vpop.f32.mrb[11].mxu0 }
 0x2d6   : > { %v625_v58 = vpop.f32.mrb[8].mxu1 }
 0x2d7   : > { %v998_v59 = vpop.f32.mrb[9].mxu1  ;;  %v634_v60 = vsel %vm393_vm2, %v625_v58, -inf }
 0x2d8   : > { %635 = vmax.xlane.f32.xlu0 %v634_v60  ;;  %v628_v61 = vpop.f32.mrb[10].mxu1 }
 0x2d9   : > { %v999_v62 = vpop.f32.mrb[11].mxu1 }
 0x2e5   : > { %654 = vrot.lane.b32.xlu1 %v414_v24, %s1293_s18 }
 0x2ee   : > { %703 = vrot.lane.b32.xlu0 %v415_v27, %s1293_s18 }
 0x361   : > { %v633_v63 = vpop.xlane.xlu1 %632 }
 0x362   : > { %v637_v0 = vsub.f32 %v573_v53, %v633_v63 }
 0x364   : > { %v639_v1 = vmul.f32 1.442695, %v637_v0 }
 0x365   : > { %v636_v2 = vpop.xlane.xlu0 %635  ;;  %v655_v3 = vpop.permute.xlu1 %654 }
 0x366   : > { %1096 = vpow2.f32 %v639_v1  ;;  %v638_v4 = vsub.f32 %v625_v58, %v636_v2  ;;  %v660_v5 = vsel %vm419_vm3, %v655_v3, 0 }
 0x367   : > { %1001 = vmatpush3.bf16.msra.mxu0 %v660_v5 }
 0x368   : > { %v641_v6 = vmul.f32 1.442695, %v638_v4 }
 0x369   : > { %v704_v7 = vpop.permute.xlu0 %703 }
 0x36a   : > { %1098 = vpow2.f32 %v641_v6  ;;  %v709_v8 = vsel %vm419_vm3, %v704_v7, 0 }
 0x36b   : > { %1007 = vmatpush3.bf16.msra.mxu1 %v709_v8 }
 0x370   : > { %v1097_v9 = vpop.eup %1096 }
 0x371   : > { %v643_v10 = vsel %vm393_vm2, %v1097_v9, 0.0  ;;  %v649_v11 = vpack.c.bf16 %v1097_v9, %v1097_v9 }
 0x372   : > { %644 = vadd.xlane.f32.xlu1 %v643_v10 }
 0x373   : > { %1003 = vmatmul.mubr.msk.bf16.vlgmr.msra.gmra.mrb[12].mxu0 %vm393_vm2, %v649_v11 }
 0x374   : > { %v1099_v12 = vpop.eup %1098 }
 0x375   : > { %v646_v13 = vsel %vm393_vm2, %v1099_v12, 0.0  ;;  %v650_v15 = vpack.c.bf16 %v1099_v12, %v1099_v12 }
 0x376   : > { %647 = vadd.xlane.f32.xlu0 %v646_v13  ;;  %407 = vadd.xlane.f32.xlu1 %v406_v14 }
 0x377   : > { %1009 = vmatmul.mubr.msk.bf16.vlgmr.msra.gmra.mrb[12].mxu1 %vm393_vm2, %v650_v15 }
 0x37a   : > { %410 = vadd.xlane.f32.xlu1 %v409_v16 }
 0x3ff   : > { %v645_v17 = vpop.xlane.xlu1 %644 }
 0x400   : > { %1100 = vrcp.f32 %v645_v17 }
 0x403   : > { %v648_v18 = vpop.xlane.xlu0 %647  ;;  %v408_v31 = vpop.xlane.xlu1 %407 }
 0x404   : > { %1102 = vrcp.f32 %v648_v18 }
 0x405   : > { %1104 = vrcp.f32 %v408_v31 }
 0x407   : > { %v411_v32 = vpop.xlane.xlu1 %410 }
 0x408   : > { %1106 = vrcp.f32 %v411_v32 }
 0x40a   : > { %v1101_v19 = vpop.eup %1100 }
 0x40e   : > { %v1103_v25 = vpop.eup %1102 }
 0x40f   : > { %v1105_v33 = vpop.eup %1104 }
 0x410   : > { %v513_v34 = vmul.f32 %v1105_v33, %v1596_v45 }
 0x412   : > { %v1107_v35 = vpop.eup %1106 }
 0x413   : > { %v514_v38 = vmul.f32 %v1107_v35, %v1598_v49 }
 0x446   : > { %v696_v20 = vpop.f32.mrb[12].mxu0 }
 0x447   : > { %v755_v21 = vmul.f32 %v1101_v19, %v696_v20  ;;  %v1004_v22 = vpop.f32.mrb[13].mxu0 }
 0x448   : > { %v699_v23 = vpop.f32.mrb[14].mxu0 }
 0x449   : > { %759 = vrot.lane.b32.xlu1 %v755_v21, %s1294_s16  ;;  %v1005_v24 = vpop.f32.mrb[15].mxu0 }
 0x44a   : > { %v745_v26 = vpop.f32.mrb[12].mxu1 }
 0x44b   : > { %v756_v27 = vmul.f32 %v1103_v25, %v745_v26  ;;  %v1010_v28 = vpop.f32.mrb[13].mxu1 }
 0x44c   : > { %v748_v29 = vpop.f32.mrb[14].mxu1 }
 0x44d   : > { %v1011_v30 = vpop.f32.mrb[15].mxu1  ;;  %761 = vrot.lane.b32.xlu0 %v756_v27, %s1294_s16 }
 0x4bb   : > { %v760_v36 = vpop.permute.xlu1 %759 }
 0x4bc   : > { %v765_v37 = vsel %vm300_vm1, %v513_v34, %v760_v36 }
 0x4bd   : > { %768 = vst.msk [vmem:[%s282_s20] sm:$0xff] %vm767_vm4, %v765_v37 }
 0x4bf   : > { %v762_v39 = vpop.permute.xlu0 %761 }
 0x4c0   : > { %v766_v40 = vsel %vm300_vm1, %v514_v38, %v762_v39 }
 0x4c1   : > { %769 = vst.msk [vmem:[%s282_s20 + $0x8] sm:$0xff] %vm767_vm4, %v766_v40 }
 0x4c2   : > { %1211 = shalt.err (!%p1208_p13)
}
 0x4c3   : > { %s1212_s23 = scalar_lea.hbm %s1624_s8, 256  ;;  %s1216_s22 = scalar_lea.hbm %s1677_s3, 512 }
 0x4c4   : > { %p1213_p11 = scmp.ne.s32.totalorder %s1624_s8, %s1212_s23  ;;  %p1217_p7 = scmp.lt.u32.totalorder %s1624_s8, %s1677_s3 }
 0x4c5   : > { %p1218_p4 = scmp.lt.u32.totalorder %s1216_s22, %s1212_s23  ;;  %p1220_p0 = scmp.lt.u32.totalorder %s1212_s23, %s1624_s8 }
 0x4c6   : > { %p1214_p2 = pnand %p1213_p11, %p1706_p10 }
 0x4c7   : > { %p1219_p3 = por %p1218_p4, %p1217_p7 }
 0x4c8   : > { %p1215_p5 = pneg %p1214_p2 }
 0x4c9   : > { %p1221_p8 = por %p1220_p0, %p1219_p3 }
 0x4cb   : > { %p1222_p9 = pnand %p1221_p8, %p1215_p5 }
 0x4cd   : > { %1225 = shalt.err (!%p1222_p9)
}
 0x4ce   : > { %s1296_s9 = smov 128   ;;  %s1297_s18 = smov 8  }
 0x4cf   : > { %1018 = dma.vmem_to_hbm [thread:$0]  (%p1706_p10), %s1618_s5, 256, %s1624_s8, %s771_s15, %s1296_s9, %s1296_s9, %s1297_s18  }
 0x4d0 PF: > { %s800_s24 = sand.u32 1, %s1264_s12   ;;  %p1707_p12 = scmp.ne.s32.totalorder %s1694_s27, 0 }
 0x4d1   : > { %p1708_p1 = scmp.ge.s32.totalorder %s1284_s17, 2  ;;  %s801_s16 = scalar_lea.sflag [#allocation4], %s800_s24 }
 0x4d3   : > { %p1031_p6 = pnand %p1708_p1, %p1707_p12 }
 0x4d5   : > { %1259 = dma.done.wait (!%p1031_p6), %s801_s16, 256  }
 0x4d6   : > { %1261 = vsyncadd (!%p1031_p6), %s801_s16, 4294967040  ;;  %s22_s17 = sadd.s32 1, %s1284_s17   ;;  %s1709_s20 = sld [smem:[#allocation14_spill]] }
 0x4d7   : > { %p19_p13 = scmp.ge.s32.totalorder %s22_s17, 4   ;;  %s1710_s15 = sld [smem:[#allocation12_spill]] }
 0x4d8   : > { %s1711_s16 = sld [smem:[#allocation13_spill]]  ;;  %s1712_s12 = smov %s1268_s13 }
 0x4d9   : > { %s1713_s13 = smov %s1272_s14  ;;  %21 = sbr.rel (!%p19_p13) target bundleno = 10 (0xa), region = 101 }
 0x4dc   : > { %s1714_s14 = smov %s1709_s20 }
 0x4e0   :  { %806 = vsyncpa [#allocation3], 1 }
 0x4e1   :  { %808 = vsyncpa [#allocation3 + $0x1], 1 }
 0x4e2   :  { %809 = vsyncpa [#allocation6], 1 }
 0x4e3   :  { %811 = vsyncpa [#allocation6 + $0x1], 1 }
 0x4e4   :  { %812 = vsyncpa [#allocation4], 1 }
 0x4e5   :  { %814 = vsyncpa [#allocation4 + $0x1], 1 }

</bundles_post_ra>
